<compile_context>
chip_gen: v7x
topology: tpu7x:2x2x1
jax: 0.10.0
libtpu: 0.0.40
codegen_flags: <defaults>
</compile_context>

<pallas_src>
import jax
import jax.numpy as jnp
import numpy as np
from jax import lax
from jax.experimental import pallas as pl
from jax.experimental.pallas import tpu as pltpu

NEG_SLOPE = 0.01  # torch.nn.LeakyReLU default negative_slope


def _leaky_relu(v):
    return jnp.where(v >= 0, v, NEG_SLOPE * v)


# ------------------------------------------------------------------ fused kernel
def _expr_decoder_kernel(x_ref, w1t_ref, b1_ref, w2t_ref, b2_ref, w3_ref, b3_ref,
                         o_ref):
    xb = x_ref[...]                                            # (tm, D) rows on sublanes

    # Layer 1:  h1^T = W1^T @ x^T  -> (D, tm).
    # Expressed as an NT matmul (contract last dim of both operands) so the
    # row index moves onto lanes with zero in-kernel transposes.
    h = lax.dot_general(w1t_ref[...], xb,
                        dimension_numbers=(((1,), (1,)), ((), ())),
                        preferred_element_type=jnp.float32)
    h = _leaky_relu(h + b1_ref[...])                           # b1 column (D,1) bcast over lanes

    # Layer 2: standard (D, D) @ (D, tm) matmul on the MXU.
    h = jnp.dot(w2t_ref[...], h, preferred_element_type=jnp.float32)
    h = _leaky_relu(h + b2_ref[...])

    # Layer 3 (D -> 1): elementwise scale + sublane reduction -> lane-dense (1, tm).
    y = jnp.sum(h * w3_ref[...], axis=0, keepdims=True) + b3_ref[...]

    o_ref[...] = y[None].astype(o_ref.dtype)                   # (1, 1, tm)


# ------------------------------------------------------------------ wrapper
def expr_decoder_forward(x, params, *, row_tile=512):
    """x: (B, T, D) float32 -> {"pred": (B, T)}"""
    B, T, D = x.shape
    N = B * T
    xf = x.reshape(N, D)

    # Row tile: full array if small (keeps blocks == full dims, single step),
    # otherwise a 512-row tile with a cdiv grid (ragged last tile is clipped
    # by Pallas; its lanes are discarded below).
    tm = N if N <= row_tile else row_tile
    n_steps = pl.cdiv(N, tm)

    # One-time tiny re-layout of the parameters (weights stay VMEM-resident
    # across all grid steps inside the kernel).
    w1t = params["w1"].T                       # (D, D)
    w2t = params["w2"].T                       # (D, D)
    b1c = params["b1"].reshape(D, 1)
    b2c = params["b2"].reshape(D, 1)
    w3c = params["w3"].reshape(D, 1)
    b3s = params["b3"].reshape(1, 1)

    flops = N * (4 * D * D + 2 * D)
    bytes_accessed = (N * D + N + 2 * D * D + 3 * D + 1) * 4

    out = pl.pallas_call(
        _expr_decoder_kernel,
        out_shape=jax.ShapeDtypeStruct((n_steps, 1, tm), x.dtype),
        grid=(n_steps,),
        in_specs=[
            pl.BlockSpec((tm, D), lambda i: (i, 0)),    # x rows (tiled, pipelined)
            pl.BlockSpec((D, D), lambda i: (0, 0)),     # w1^T  (VMEM-resident)
            pl.BlockSpec((D, 1), lambda i: (0, 0)),     # b1 (column)
            pl.BlockSpec((D, D), lambda i: (0, 0)),     # w2^T
            pl.BlockSpec((D, 1), lambda i: (0, 0)),     # b2 (column)
            pl.BlockSpec((D, 1), lambda i: (0, 0)),     # w3 (column)
            pl.BlockSpec((1, 1), lambda i: (0, 0)),     # b3 (scalar)
        ],
        out_specs=pl.BlockSpec((1, 1, tm), lambda i: (i, 0, 0)),
        compiler_params=pltpu.CompilerParams(
            dimension_semantics=("parallel",)),
        cost_estimate=pl.CostEstimate(flops=flops, transcendentals=0,
                                      bytes_accessed=bytes_accessed),
    )(xf, w1t, b1c, w2t, b2c, w3c, b3s)

    pred = out.reshape(n_steps * tm)[:N].reshape(B, T)
    return {"pred": pred}


# ------------------------------------------------------------------ reference
def _ref_expr_decoder(x, params):
    h = _leaky_relu(x @ params["w1"] + params["b1"])
    h = _leaky_relu(h @ params["w2"] + params["b2"])
    y = h @ params["w3"] + params["b3"]
    return {"pred": y[..., 0]}


# ------------------------------------------------------------------ params
def init_params(key, d, std=0.1):
    k1, k2, k3, k4, k5 = jax.random.split(key, 5)
    f = jnp.float32
    return {
        "w1": jax.random.normal(k1, (d, d), f) * std,
        "b1": jax.random.normal(k4, (d,), f) * 0.02,
        "w2": jax.random.normal(k2, (d, d), f) * std,
        "b2": jax.random.normal(k5, (d,), f) * 0.02,
        "w3": jax.random.normal(k3, (d, 1), f) * std,
        "b3": jnp.zeros((1,), f),
    }


# ------------------------------------------------------------------ main
if __name__ == "__main__":
    B, T, D = 2, 8, 32  # batch, seq_len, d_model

    key = jax.random.PRNGKey(0)
    k_x, k_p = jax.random.split(key)
    x = jax.random.normal(k_x, (B, T, D), jnp.float32)
    params = init_params(k_p, D)

    out = expr_decoder_forward(x, params)
    out = jax.block_until_ready(out)

    ref = _ref_expr_decoder(x, params)
    np.testing.assert_allclose(np.asarray(out["pred"]), np.asarray(ref["pred"]),
                               rtol=2e-2, atol=2e-2)
    assert out["pred"].shape == (B, T)

    # Also exercise the multi-step / ragged-tile path (N > row_tile, N % tile != 0).
    B2, T2 = 4, 300
    x2 = jax.random.normal(jax.random.PRNGKey(1), (B2, T2, D), jnp.float32)
    out2 = jax.block_until_ready(expr_decoder_forward(x2, params))
    ref2 = _ref_expr_decoder(x2, params)
    np.testing.assert_allclose(np.asarray(out2["pred"]), np.asarray(ref2["pred"]),
                               rtol=2e-2, atol=2e-2)

    print("KERNEL_OK")
</pallas_src>

<mosaic_0001>
module attributes {stable_mosaic.version = 11 : i64} {
  func.func @_expr_decoder_kernel(%arg0: i32, %arg1: memref<16x32xf32, #tpu.memory_space<vmem>>, %arg2: memref<32x32xf32, #tpu.memory_space<vmem>>, %arg3: memref<32x1xf32, #tpu.memory_space<vmem>>, %arg4: memref<32x32xf32, #tpu.memory_space<vmem>>, %arg5: memref<32x1xf32, #tpu.memory_space<vmem>>, %arg6: memref<32x1xf32, #tpu.memory_space<vmem>>, %arg7: memref<1x1xf32, #tpu.memory_space<vmem>>, %arg8: memref<1x1x16xf32, #tpu.memory_space<vmem>>) attributes {dimension_semantics = [#tpu.dimension_semantics<parallel>], iteration_bounds = array<i64: 1>, scalar_prefetch = 0 : i64, scratch_operands = 0 : i64, tpu.core_type = #tpu.core_type<tc>, window_params = [{transform_indices = @transform_0, window_bounds = array<i64: 16, 32>}, {pipeline_mode = #tpu.pipeline_mode<synchronous>, transform_indices = @transform_1, window_bounds = array<i64: 32, 32>}, {pipeline_mode = #tpu.pipeline_mode<synchronous>, transform_indices = @transform_2, window_bounds = array<i64: 32, 1>}, {pipeline_mode = #tpu.pipeline_mode<synchronous>, transform_indices = @transform_3, window_bounds = array<i64: 32, 32>}, {pipeline_mode = #tpu.pipeline_mode<synchronous>, transform_indices = @transform_4, window_bounds = array<i64: 32, 1>}, {pipeline_mode = #tpu.pipeline_mode<synchronous>, transform_indices = @transform_5, window_bounds = array<i64: 32, 1>}, {pipeline_mode = #tpu.pipeline_mode<synchronous>, transform_indices = @transform_6, window_bounds = array<i64: 1, 1>}, {transform_indices = @transform_7, window_bounds = array<i64: 1, 1, 16>}]} {
    %c0 = arith.constant 0 : index
    %c0_0 = arith.constant 0 : index
    %0 = vector.load %arg1[%c0, %c0_0] : memref<16x32xf32, #tpu.memory_space<vmem>>, vector<16x32xf32>
    %c0_1 = arith.constant 0 : index
    %c0_2 = arith.constant 0 : index
    %1 = vector.load %arg2[%c0_1, %c0_2] : memref<32x32xf32, #tpu.memory_space<vmem>>, vector<32x32xf32>
    %cst = arith.constant dense<0.000000e+00> : vector<32x16xf32>
    %2 = tpu.matmul %1, %0, %cst {dimension_numbers = #tpu.dot_dimension_numbers<[1], [1], [0], [0], [0, 0, 1, 0], [], []>} : vector<32x32xf32>, vector<16x32xf32>, vector<32x16xf32> -> vector<32x16xf32>
    %c0_3 = arith.constant 0 : index
    %c0_4 = arith.constant 0 : index
    %3 = vector.load %arg3[%c0_3, %c0_4] : memref<32x1xf32, #tpu.memory_space<vmem>>, vector<32x1xf32>
    %4 = vector.broadcast %3 : vector<32x1xf32> to vector<32x16xf32>
    %5 = arith.addf %2, %4 : vector<32x16xf32>
    %cst_5 = arith.constant 0.000000e+00 : f32
    %6 = vector.broadcast %cst_5 : f32 to vector<32x16xf32>
    %7 = arith.cmpf oge, %5, %6 : vector<32x16xf32>
    %cst_6 = arith.constant 0.00999999977 : f32
    %8 = vector.broadcast %cst_6 : f32 to vector<32x16xf32>
    %9 = arith.mulf %8, %5 : vector<32x16xf32>
    %10 = arith.select %7, %5, %9 : vector<32x16xi1>, vector<32x16xf32>
    %c0_7 = arith.constant 0 : index
    %c0_8 = arith.constant 0 : index
    %11 = vector.load %arg4[%c0_7, %c0_8] : memref<32x32xf32, #tpu.memory_space<vmem>>, vector<32x32xf32>
    %cst_9 = arith.constant dense<0.000000e+00> : vector<32x16xf32>
    %12 = tpu.matmul %11, %10, %cst_9 {dimension_numbers = #tpu.dot_dimension_numbers<[1], [0], [0], [1], [0, 0, 1, 1], [], []>} : vector<32x32xf32>, vector<32x16xf32>, vector<32x16xf32> -> vector<32x16xf32>
    %c0_10 = arith.constant 0 : index
    %c0_11 = arith.constant 0 : index
    %13 = vector.load %arg5[%c0_10, %c0_11] : memref<32x1xf32, #tpu.memory_space<vmem>>, vector<32x1xf32>
    %14 = vector.broadcast %13 : vector<32x1xf32> to vector<32x16xf32>
    %15 = arith.addf %12, %14 : vector<32x16xf32>
    %cst_12 = arith.constant 0.000000e+00 : f32
    %16 = vector.broadcast %cst_12 : f32 to vector<32x16xf32>
    %17 = arith.cmpf oge, %15, %16 : vector<32x16xf32>
    %cst_13 = arith.constant 0.00999999977 : f32
    %18 = vector.broadcast %cst_13 : f32 to vector<32x16xf32>
    %19 = arith.mulf %18, %15 : vector<32x16xf32>
    %20 = arith.select %17, %15, %19 : vector<32x16xi1>, vector<32x16xf32>
    %c0_14 = arith.constant 0 : index
    %c0_15 = arith.constant 0 : index
    %21 = vector.load %arg6[%c0_14, %c0_15] : memref<32x1xf32, #tpu.memory_space<vmem>>, vector<32x1xf32>
    %22 = vector.broadcast %21 : vector<32x1xf32> to vector<32x16xf32>
    %23 = arith.mulf %20, %22 : vector<32x16xf32>
    %cst_16 = arith.constant dense<0.000000e+00> : vector<16xf32>
    %24 = vector.multi_reduction <add>, %23, %cst_16 [0] : vector<32x16xf32> to vector<16xf32>
    %25 = vector.shape_cast %24 : vector<16xf32> to vector<1x16xf32>
    %c0_17 = arith.constant 0 : index
    %c0_18 = arith.constant 0 : index
    %26 = vector.load %arg7[%c0_17, %c0_18] : memref<1x1xf32, #tpu.memory_space<vmem>>, vector<1x1xf32>
    %27 = vector.broadcast %26 : vector<1x1xf32> to vector<1x16xf32>
    %28 = arith.addf %25, %27 : vector<1x16xf32>
    %29 = vector.shape_cast %28 : vector<1x16xf32> to vector<1x1x16xf32>
    %c0_19 = arith.constant 0 : index
    %c0_20 = arith.constant 0 : index
    %c0_21 = arith.constant 0 : index
    %30 = vector.load %arg8[%c0_19, %c0_20, %c0_21] : memref<1x1x16xf32, #tpu.memory_space<vmem>>, vector<1x1x16xf32>
    tpu.vector_store %arg8[%c0_19, %c0_20, %c0_21], %29 {strides = array<i32>} : memref<1x1x16xf32, #tpu.memory_space<vmem>>, vector<1x1x16xf32>,
    return
  }
  func.func @transform_0(%arg0: i32) -> (i32, i32) {
    %c0_i32 = arith.constant 0 : i32
    %c0_i32_0 = arith.constant 0 : i32
    return %arg0, %c0_i32 : i32, i32
  }
  func.func @transform_1(%arg0: i32) -> (i32, i32) {
    %c0_i32 = arith.constant 0 : i32
    %c0_i32_0 = arith.constant 0 : i32
    %c0_i32_1 = arith.constant 0 : i32
    return %c0_i32, %c0_i32_0 : i32, i32
  }
  func.func @transform_2(%arg0: i32) -> (i32, i32) {
    %c0_i32 = arith.constant 0 : i32
    %c0_i32_0 = arith.constant 0 : i32
    %c0_i32_1 = arith.constant 0 : i32
    return %c0_i32, %c0_i32_0 : i32, i32
  }
  func.func @transform_3(%arg0: i32) -> (i32, i32) {
    %c0_i32 = arith.constant 0 : i32
    %c0_i32_0 = arith.constant 0 : i32
    %c0_i32_1 = arith.constant 0 : i32
    return %c0_i32, %c0_i32_0 : i32, i32
  }
  func.func @transform_4(%arg0: i32) -> (i32, i32) {
    %c0_i32 = arith.constant 0 : i32
    %c0_i32_0 = arith.constant 0 : i32
    %c0_i32_1 = arith.constant 0 : i32
    return %c0_i32, %c0_i32_0 : i32, i32
  }
  func.func @transform_5(%arg0: i32) -> (i32, i32) {
    %c0_i32 = arith.constant 0 : i32
    %c0_i32_0 = arith.constant 0 : i32
    %c0_i32_1 = arith.constant 0 : i32
    return %c0_i32, %c0_i32_0 : i32, i32
  }
  func.func @transform_6(%arg0: i32) -> (i32, i32) {
    %c0_i32 = arith.constant 0 : i32
    %c0_i32_0 = arith.constant 0 : i32
    %c0_i32_1 = arith.constant 0 : i32
    return %c0_i32, %c0_i32_0 : i32, i32
  }
  func.func @transform_7(%arg0: i32) -> (i32, i32, i32) {
    %c0_i32 = arith.constant 0 : i32
    %c0_i32_0 = arith.constant 0 : i32
    %c0_i32_1 = arith.constant 0 : i32
    return %arg0, %c0_i32, %c0_i32_0 : i32, i32, i32
  }
}

</mosaic_0001>

<bundles_post_ra>
// kernel: tpu_custom_call.1
= control target key start
LH: loop header
LB: loop body
LE: loop exit
PB: predicated region body
PF: predicated region fallthrough
CT: control target
= control target key end

     0   :  { %s608_s0 = inlined_call_operand.vmem [shape: f32[16,32], index: 0, kind: input, shape index: {}]   ;;  %s609_s1 = inlined_call_operand.vmem [shape: f32[32,32], index: 1, kind: input, shape index: {}]   ;;  %s610_s2 = inlined_call_operand.vmem [shape: f32[32,1], index: 2, kind: input, shape index: {}]   ;;  %s611_s3 = inlined_call_operand.vmem [shape: f32[32,32], index: 3, kind: input, shape index: {}]   ;;  %s612_s4 = inlined_call_operand.vmem [shape: f32[32,1], index: 4, kind: input, shape index: {}]   ;;  %s613_s5 = inlined_call_operand.vmem [shape: f32[32,1], index: 5, kind: input, shape index: {}]   ;;  %s614_s6 = inlined_call_operand.<no memory space> [shape: f32[1,1], index: 6, kind: input, shape index: {}]   ;;  %s615_s7 = inlined_call_operand.hbm [shape: f32[1,1,16], index: 7, kind: output, shape index: {}]  }
   0x1   :  { %v12_v0 = vstv %s614_s6 }
   0x2   :  { %13 = vst [vmem:[#allocation2] sm:$0x1] %v12_v0 }
   0x3   :  { %v29_v1 = vld [vmem:[%s608_s0] sm:$0xff]  ;;  %v30_v2 = vld [vmem:[%s608_s0 + $0x8] sm:$0xff]  ;;  %vm59_vm0 = vcmask 261120   ;;  %v471_v5 = vmov 0   ;;  %v37_v7 = vld [vmem:[%s610_s2 + $0x10] sm:$0xff] }
   0x4   :  { %v31_v3 = vld [vmem:[%s609_s1] sm:$0xff]  ;;  %v429_v4 = vpack.c.bf16 %v30_v2, %v29_v1  ;;  %vm430_vm1 = vmpackc.low %vm59_vm0, %vm59_vm0  ;;  %445 = vset.pattern.permute.xlu0 %v471_v5  ;;  %446 = vset.pattern.permute.xlu1 %v471_v5  ;;  %v36_v8 = vld [vmem:[%s610_s2 + $0x8] sm:$0xff] }
   0x5   :  { %409 = vmatprep.mubr.msk.f32.mxu0 %vm59_vm0, %v31_v3  ;;  %v35_v6 = vld [vmem:[%s610_s2] sm:$0xff]  ;;  %51 = vperm.xlu1 %446, %v37_v7   ;;  %v38_v9 = vld [vmem:[%s610_s2 + $0x18] sm:$0xff] }
   0x6   :  { %431 = vmatprep.subr.msk.bf16.mxu0 %vm430_vm1, %v429_v4  ;;  %41 = vperm.xlu0 %445, %v35_v6  }
   0x7   :  { %434 = vmatpush3.bf16.xpose.msk.msra.mxu0 %vm430_vm1, %v429_v4 }
   0x8   :  { %14 = vsyncpa [#allocation4], 0  ;;  %v32_v10 = vld [vmem:[%s609_s1 + $0x8] sm:$0xff]  ;;  %v179_v11 = vld [vmem:[%s612_s4] sm:$0xff]  ;;  %vm340_vm8 = vcmask 130048   ;;  %vm365_vm11 = vcmask 122880  }
   0x9   :  { %56 = vperm.xlu1 %446, %v38_v9   ;;  %v33_v12 = vld [vmem:[%s609_s1 + $0x10] sm:$0xff]  ;;  %v180_v13 = vld [vmem:[%s612_s4 + $0x8] sm:$0xff]  ;;  %v34_v14 = vld [vmem:[%s609_s1 + $0x18] sm:$0xff] }
   0xa   :  { %46 = vperm.xlu0 %445, %v36_v8   ;;  %v181_v15 = vld [vmem:[%s612_s4 + $0x10] sm:$0xff]  ;;  %v182_v16 = vld [vmem:[%s612_s4 + $0x18] sm:$0xff]  ;;  %v312_v17 = vld [vmem:[%s613_s5] sm:$0xff] }
   0xb   :  { %v313_v18 = vld [vmem:[%s613_s5 + $0x8] sm:$0xff]  ;;  %v314_v19 = vld [vmem:[%s613_s5 + $0x10] sm:$0xff]  ;;  %v315_v20 = vld [vmem:[%s613_s5 + $0x18] sm:$0xff] }
   0xc   :  { %v354_v21 = vld [vmem:[#allocation2] sm:$0x1]  ;;  %v176_v45 = vld [vmem:[%s611_s3 + $0x8] sm:$0xff]  ;;  %v177_v46 = vld [vmem:[%s611_s3 + $0x10] sm:$0xff] }
   0xd   :  { %190 = vperm.xlu1 %446, %v180_v13   ;;  %v175_v22 = vld [vmem:[%s611_s3] sm:$0xff]  ;;  %v178_v47 = vld [vmem:[%s611_s3 + $0x18] sm:$0xff]  ;;  %s472_s3 = smov [#allocation3]  }
   0xe   :  { %410 = vmatmul.mubr.msk.f32.vlgmr.msra.gmra.mrb[0].mxu0 %vm59_vm0, %v32_v10  ;;  %185 = vperm.xlu0 %445, %v179_v11   ;;  %s373_s16 = sshll.u32 %s472_s3, 4  ;;  %s374_s16 = int_to_ptr.vmem [resolvable:$true] %s373_s16 }
   0xf   :  { %412 = vmatprep.mubr.msk.f32.mxu0 %vm59_vm0, %v33_v12  ;;  %423 = vmatprep.mubr.msk.f32.mxu1 %vm59_vm0, %v175_v22  ;;  %s447_s17 = scalar_lea.vmem %s374_s16, 16  ;;  %s451_s18 = scalar_lea.vmem %s374_s16, 32 }
  0x10   :  { %p448_p0 = scmp.ne.s32.totalorder %s374_s16, %s447_s17  ;;  %p452_p1 = scmp.lt.s32.totalorder %s374_s16, %s374_s16 }
  0x11   :  { %200 = vperm.xlu1 %446, %v182_v16   ;;  %p453_p2 = scmp.lt.s32.totalorder %s451_s18, %s447_s17 }
  0x12   :  { %413 = vmatmul.mubr.msk.f32.gmra.mrb[2].mxu0 %vm59_vm0, %v34_v14  ;;  %195 = vperm.xlu0 %445, %v181_v15  }
  0x13   :  { %p454_p3 = por %p453_p2, %p452_p1 }
  0x15   :  { %323 = vperm.xlu1 %446, %v313_v18   ;;  %v360_v18 = vlaneseq  ;;  %p455_p4 = pnand %p454_p3, %p448_p0 }
  0x16   :  { %318 = vperm.xlu0 %445, %v312_v17  }
  0x19   :  { %333 = vperm.xlu1 %446, %v315_v20  }
  0x1a   :  { %328 = vperm.xlu0 %445, %v314_v19  }
  0x1e   :  { %357 = vperm.xlu0 %445, %v354_v21   ;;  %v361_v21 = vshrl.u32 %v360_v18, 7 }
  0x84   :  { %v52_v24 = vpop.permute.xlu1 %51 }
  0x85   :  { %v42_v23 = vpop.permute.xlu0 %41 }
  0x88   :  { %v57_v31 = vpop.permute.xlu1 %56 }
  0x89   :  { %v47_v25 = vpop.permute.xlu0 %46 }
  0x8c   :  { %v191_v49 = vpop.permute.xlu1 %190 }
  0x8d   :  { %v186_v48 = vpop.permute.xlu0 %185 }
  0x90   :  { %v201_v51 = vpop.permute.xlu1 %200 }
  0x91   :  { %v196_v50 = vpop.permute.xlu0 %195 }
  0x94   :  { %v324_v58 = vpop.permute.xlu1 %323 }
  0x95   :  { %v319_v56 = vpop.permute.xlu0 %318 }
  0x98   :  { %v334_v10 = vpop.permute.xlu1 %333 }
  0x99   :  { %v329_v9 = vpop.permute.xlu0 %328 }
  0xe1   :  { %v411_v26 = vpop.f32.mrb[0].mxu0 }
  0xe2   :  { %v150_v27 = vadd.f32 %v411_v26, %v47_v25  ;;  %v144_v28 = vpop.f32.mrb[1].mxu0  ;;  %v358_v26 = vpop.permute.xlu0 %357 }
  0xe3   :  { %v145_v29 = vadd.f32 %v144_v28, %v42_v23 }
  0xe4   :  { %v168_v30 = vmul.f32 0.01, %v150_v27  ;;  %vm164_vm2 = vcmp.ge.f32.partialorder %v150_v27, 0.0 }
  0xe5   :  { %v167_v32 = vmul.f32 0.01, %v145_v29  ;;  %v414_v33 = vpop.f32.mrb[2].mxu0  ;;  %vm163_vm3 = vcmp.ge.f32.partialorder %v145_v29, 0.0 }
  0xe6   :  { %v160_v34 = vadd.f32 %v414_v33, %v57_v31  ;;  %v154_v35 = vpop.f32.mrb[3].mxu0  ;;  %v172_v36 = vsel %vm164_vm2, %v150_v27, %v168_v30 }
  0xe7   :  { %v155_v37 = vadd.f32 %v154_v35, %v52_v24  ;;  %v171_v38 = vsel %vm163_vm3, %v145_v29, %v167_v32  ;;  %v362_v24 = vsub.s32 0, %v361_v21 }
  0xe8   :  { %vm166_vm4 = vcmp.ge.f32.partialorder %v160_v34, 0.0  ;;  %v170_v39 = vmul.f32 0.01, %v160_v34  ;;  %v435_v40 = vpack.c.bf16 %v172_v36, %v171_v38 }
  0xe9   :  { %vm165_vm5 = vcmp.ge.f32.partialorder %v155_v37, 0.0  ;;  %v169_v41 = vmul.f32 0.01, %v155_v37  ;;  %v363_v28 = vrot.slane %v358_v26, %v362_v24 }
  0xea   :  { %436 = vmatprep.subr.bf16.mxu1 %v435_v40  ;;  %v174_v42 = vsel %vm166_vm4, %v160_v34, %v170_v39 }
  0xeb   :  { %438 = vmatpush3.bf16.msra.mxu1 %v435_v40  ;;  %v173_v43 = vsel %vm165_vm5, %v155_v37, %v169_v41 }
  0xec   :  { %v439_v44 = vpack.c.bf16 %v174_v42, %v173_v43 }
  0xee   :  { %440 = vmatprep.subr.bf16.mxu1 %v439_v44 }
  0xef   :  { %442 = vmatpush3.bf16.msra.mxu1 %v439_v44 }
  0xf2   :  { %424 = vmatmul.mubr.msk.f32.vlgmr.msra.gmra.mrb[0].mxu1 %vm59_vm0, %v176_v45 }
  0xf3   :  { %426 = vmatprep.mubr.msk.f32.mxu1 %vm59_vm0, %v177_v46 }
  0xf6   :  { %427 = vmatmul.mubr.msk.f32.gmra.mrb[2].mxu1 %vm59_vm0, %v178_v47 }
 0x1c5   :  { %v425_v52 = vpop.f32.mrb[0].mxu1 }
 0x1c6   :  { %v287_v53 = vadd.f32 %v425_v52, %v191_v49  ;;  %v281_v54 = vpop.f32.mrb[1].mxu1 }
 0x1c7   :  { %v282_v55 = vadd.f32 %v281_v54, %v186_v48 }
 0x1c8   :  { %vm301_vm6 = vcmp.ge.f32.partialorder %v287_v53, 0.0  ;;  %v305_v57 = vmul.f32 0.01, %v287_v53 }
 0x1c9   :  { %vm300_vm7 = vcmp.ge.f32.partialorder %v282_v55, 0.0  ;;  %v304_v59 = vmul.f32 0.01, %v282_v55  ;;  %v428_v60 = vpop.f32.mrb[2].mxu1 }
 0x1ca   :  { %v309_v61 = vsel %vm301_vm6, %v287_v53, %v305_v57  ;;  %v297_v62 = vadd.f32 %v428_v60, %v201_v51  ;;  %v291_v63 = vpop.f32.mrb[3].mxu1 }
 0x1cb   :  { %v337_v0 = vmul.f32 %v324_v58, %v309_v61  ;;  %v308_v1 = vsel %vm300_vm7, %v282_v55, %v304_v59  ;;  %v292_v2 = vadd.f32 %v291_v63, %v196_v50 }
 0x1cc   :  { %v336_v3 = vmul.f32 %v319_v56, %v308_v1  ;;  %vm303_vm9 = vcmp.ge.f32.partialorder %v297_v62, 0.0  ;;  %v307_v4 = vmul.f32 0.01, %v297_v62 }
 0x1cd   :  { %v342_v5 = vsel %vm340_vm8, %v337_v0, 0.0  ;;  %vm302_vm10 = vcmp.ge.f32.partialorder %v292_v2, 0.0  ;;  %v306_v6 = vmul.f32 0.01, %v292_v2 }
 0x1ce   :  { %v341_v7 = vsel %vm340_vm8, %v336_v3, 0.0  ;;  %v311_v8 = vsel %vm303_vm9, %v297_v62, %v307_v4 }
 0x1cf   :  { %v343_v11 = vadd.f32 %v342_v5, %v341_v7  ;;  %v310_v12 = vsel %vm302_vm10, %v292_v2, %v306_v6  ;;  %v339_v13 = vmul.f32 %v334_v10, %v311_v8 }
 0x1d0   :  { %v338_v14 = vmul.f32 %v329_v9, %v310_v12 }
 0x1d1   :  { %v346_v17 = vsel %vm340_vm8, %v339_v13, 0.0 }
 0x1d2   :  { %v344_v15 = vsel %vm340_vm8, %v338_v14, 0.0 }
 0x1d3   :  { %v345_v16 = vadd.f32 %v344_v15, %v343_v11 }
 0x1d5   :  { %v347_v19 = vadd.f32 %v346_v17, %v345_v16 }
 0x1d7   :  { %v348_v20 = vrot.slane %v347_v19, 4 }
 0x1d9   :  { %v349_v22 = vadd.f32 %v348_v20, %v347_v19 }
 0x1db   :  { %v350_v23 = vrot.slane %v349_v22, 2 }
 0x1dd   :  { %v351_v25 = vadd.f32 %v350_v23, %v349_v22 }
 0x1df   :  { %v352_v27 = vrot.slane %v351_v25, 1 }
 0x1e1   :  { %v353_v29 = vadd.f32 %v352_v27, %v351_v25 }
 0x1e3   :  { %v364_v30 = vadd.f32 %v363_v28, %v353_v29 }
 0x1e5   :  { %366 = vst.msk [vmem:[#allocation3] sm:$0x1] %vm365_vm11, %v364_v30 }
 0x1e6   :  { %458 = shalt.err (!%p455_p4)
}
 0x1e7   :  { %s459_s21 = scalar_lea.hbm %s615_s7, 16 }
 0x1e8   :  { %p460_p5 = scmp.ne.s32.totalorder %s615_s7, %s459_s21  ;;  %p463_p6 = scmp.lt.u32.totalorder %s459_s21, %s615_s7 }
 0x1ea   :  { %p465_p7 = pnand %p463_p6, %p460_p5 }
 0x1ec   :  { %468 = shalt.err (!%p465_p7)
}
 0x1ed   :  { %376 = dma.vmem_to_hbm [thread:$0]  %s374_s16, 16, %s615_s7, [#allocation4]  }
 0x1ee   :  { %469 = dma.done.wait [#allocation4], 16  }
 0x1ef   :  { %470 = vsyncadd [#allocation4], 4294967280 }
 0x1f0   :  { %380 = vsyncpa [#allocation4], 1 }

</bundles_post_ra>
